<compile_context>
chip_gen: v6e
topology: v6e:2x2x1
jax: 0.10.0
libtpu: 0.0.40
codegen_flags: <defaults>
</compile_context>

<pallas_src>
import jax
import jax.numpy as jnp
from jax.experimental import pallas as pl
from jax.experimental.pallas import tpu as pltpu

NEG_INF = -1e30
NEG_SLOPE = 0.2  # PyG GATConv default negative_slope


# ---------------------------------------------------------------------------
# Prologue: one-shot node transform + attention projections (hoisted out of the
# per-destination-tile loop).
# ---------------------------------------------------------------------------
def transform_kernel(x_ref, wt_ref, att_ref, xp_ref, asrc_ref, adst_ref):
    """x_ref [tile, Fin] bf16, wt_ref [Fin, Fout] bf16, att_ref [2, Fout] f32."""
    xp = jnp.dot(x_ref[...], wt_ref[...],
                 preferred_element_type=jnp.float32)                 # [tile, Fout] f32
    att = att_ref[...]                                               # [2, Fout] f32
    asrc_ref[...] = jnp.sum(xp * att[0:1, :], axis=1, keepdims=True)  # <xp_j, att_src>
    adst_ref[...] = jnp.sum(xp * att[1:2, :], axis=1, keepdims=True)  # <xp_i, att_dst>
    xp_ref[...] = xp.astype(xp_ref.dtype)                            # bf16 writeback


def node_transform(x_bf, wt_bf, att, *, tile=128):
    N, Fin = x_bf.shape
    Fout = wt_bf.shape[1]
    assert N % tile == 0
    return pl.pallas_call(
        transform_kernel,
        grid=(N // tile,),
        in_specs=[
            pl.BlockSpec((tile, Fin), lambda i: (i, 0)),   # node features (bf16)
            pl.BlockSpec((Fin, Fout), lambda i: (0, 0)),   # W^T (bf16, grid-invariant)
            pl.BlockSpec((2, Fout), lambda i: (0, 0)),     # [att_src; att_dst]
        ],
        out_specs=(
            pl.BlockSpec((tile, Fout), lambda i: (i, 0)),  # xp (bf16)
            pl.BlockSpec((tile, 1), lambda i: (i, 0)),     # a_src column
            pl.BlockSpec((tile, 1), lambda i: (i, 0)),     # a_dst column
        ),
        out_shape=(
            jax.ShapeDtypeStruct((N, Fout), jnp.bfloat16),
            jax.ShapeDtypeStruct((N, 1), jnp.float32),
            jax.ShapeDtypeStruct((N, 1), jnp.float32),
        ),
        compiler_params=pltpu.CompilerParams(dimension_semantics=("parallel",)),
    )(x_bf, wt_bf, att)


# ---------------------------------------------------------------------------
# Main kernel: flash-style online softmax over source tiles + weighted aggregation.
# ---------------------------------------------------------------------------
def gat_attn_kernel(adst_ref, asrc_ref, cnt_ref, xp_ref, out_ref,
                    m_sc, l_sc, acc_sc):
    """adst_ref [tn,1] f32, asrc_ref [1,ts] f32, cnt_ref [tn,ts] int8,
    xp_ref [ts,Fout] bf16, out_ref [tn,Fout] f32."""
    k = pl.program_id(1)

    @pl.when(k == 0)
    def _():
        m_sc[...] = jnp.full_like(m_sc, NEG_INF)
        l_sc[...] = jnp.zeros_like(l_sc)
        acc_sc[...] = jnp.zeros_like(acc_sc)

    # Attention logits for this (dst-tile, src-tile) block + LeakyReLU(0.2).
    logits = adst_ref[...] + asrc_ref[...]                     # [tn,1]+[1,ts] -> [tn,ts]
    logits = jnp.where(logits >= 0.0, logits, NEG_SLOPE * logits)

    # Edge multiplicities (int8 in HBM -> 4x less bandwidth for the dominant O(N^2) stream).
    cnt = cnt_ref[...].astype(jnp.int32).astype(jnp.float32)   # [tn, ts]

    # Online softmax (f32 epilogue: correct on all generations incl. v5e).
    m_prev = m_sc[...]
    m_new = jnp.maximum(m_prev, jnp.max(logits, axis=1, keepdims=True))
    alpha = jnp.exp(m_prev - m_new)
    # Count-weighted exponentials: cnt==0 (non-edge) contributes nothing; duplicate edges
    # contribute with their multiplicity, matching PyG's edge-level scatter softmax.
    p = cnt * jnp.exp(logits - m_new)                          # [tn, ts] f32
    l_sc[...] = alpha * l_sc[...] + jnp.sum(p, axis=1, keepdims=True)
    acc_sc[...] = alpha * acc_sc[...] + jnp.dot(
        p.astype(jnp.bfloat16), xp_ref[...], preferred_element_type=jnp.float32)
    m_sc[...] = m_new

    @pl.when(k == pl.num_programs(1) - 1)
    def _():
        out_ref[...] = (acc_sc[...] *
                        pl.reciprocal(l_sc[...], approx=True)).astype(out_ref.dtype)


def gat_forward(x, Wt, att, counts_i8, *, tile_n=128, tile_src=128):
    """GATConv forward. x [N,Fin] f32, Wt [Fin,Fout] f32 (= W.T), att [2,Fout] f32,
    counts_i8 [N,N] int8 edge-multiplicity matrix. Returns [N, Fout] f32."""
    N, Fin = x.shape
    Fout = Wt.shape[1]
    assert N % tile_n == 0 and N % tile_src == 0

    # Cast grid-invariant operands to bf16 once in the wrapper (halves their DMA bytes).
    x_bf = x.astype(jnp.bfloat16)
    wt_bf = Wt.astype(jnp.bfloat16)

    # Hoisted one-shot transform: xp (bf16), a_src, a_dst.
    xp_bf, asrc_col, adst_col = node_transform(x_bf, wt_bf, att, tile=tile_n)
    asrc_row = asrc_col.reshape(1, N)   # lane-dense layout for the source logits

    grid = (N // tile_n, N // tile_src)
    return pl.pallas_call(
        gat_attn_kernel,
        grid=grid,
        in_specs=[
            pl.BlockSpec((tile_n, 1), lambda i, k: (i, 0)),         # a_dst column tile
            pl.BlockSpec((1, tile_src), lambda i, k: (0, k)),       # a_src row tile
            pl.BlockSpec((tile_n, tile_src), lambda i, k: (i, k)),  # int8 edge counts
            pl.BlockSpec((tile_src, Fout), lambda i, k: (k, 0)),    # xp source panel (bf16)
        ],
        out_specs=pl.BlockSpec((tile_n, Fout), lambda i, k: (i, 0)),
        out_shape=jax.ShapeDtypeStruct((N, Fout), jnp.float32),
        scratch_shapes=[
            pltpu.VMEM((tile_n, 1), jnp.float32),      # running max m
            pltpu.VMEM((tile_n, 1), jnp.float32),      # running denom l
            pltpu.VMEM((tile_n, Fout), jnp.float32),   # running accumulator
        ],
        compiler_params=pltpu.CompilerParams(
            dimension_semantics=("parallel", "arbitrary")),
    )(adst_col, asrc_row, counts_i8, xp_bf)


# ---------------------------------------------------------------------------
# Host-side helpers / reference
# ---------------------------------------------------------------------------
def build_edge_counts(edge_index, num_nodes):
    """Dense [N,N] int8 edge-multiplicity matrix: counts[dst, src] = #edges src->dst,
    with the diagonal normalized to exactly 1 (remove_self_loops + add_self_loops,
    matching PyG GATConv's default)."""
    src, dst = edge_index[0], edge_index[1]
    c = jnp.zeros((num_nodes, num_nodes), jnp.float32)
    c = c.at[dst, src].add(1.0)
    diag = jnp.arange(num_nodes)
    c = c.at[diag, diag].set(1.0)
    return c.astype(jnp.int8)


def ref_gat_pyg(x, Wt, att, edge_index, num_nodes):
    """Pure-JAX f32 edge-list reference of pyg.nn.GATConv(heads=1, bias=False,
    add_self_loops=True, dropout=0) forward (counts duplicate edges, like PyG)."""
    src, dst = edge_index[0], edge_index[1]
    keep = src != dst                               # remove_self_loops
    src, dst = src[keep], dst[keep]
    loop = jnp.arange(num_nodes)
    src = jnp.concatenate([src, loop])              # add_self_loops
    dst = jnp.concatenate([dst, loop])

    xp = x @ Wt                                     # [N, Fout]
    e = (xp @ att[1])[dst] + (xp @ att[0])[src]
    e = jnp.where(e >= 0.0, e, NEG_SLOPE * e)
    m = jax.ops.segment_max(e, dst, num_segments=num_nodes)
    p = jnp.exp(e - m[dst])
    denom = jax.ops.segment_sum(p, dst, num_segments=num_nodes)
    alpha = p / denom[dst]
    return jax.ops.segment_sum(alpha[:, None] * xp[src], dst, num_segments=num_nodes)


if __name__ == "__main__":
    # Small deterministic shapes consistent with the module:
    #   node_feature [N, dim_in], edge_index [2, E]; dim_out lane-dense (128).
    N, Fin, Fout, E = 256, 8, 128, 1024
    TILE_N, TILE_SRC = 128, 128   # sweep 256 on v6e / v7x (2x256 MXU)

    key = jax.random.PRNGKey(0)
    kx, ke1, ke2, kw, ka = jax.random.split(key, 5)

    x = jax.random.normal(kx, (N, Fin), jnp.float32)
    src = jax.random.randint(ke1, (E,), 0, N)
    dst = jax.random.randint(ke2, (E,), 0, N)
    edge_index = jnp.stack([src, dst], axis=0)          # [2, E]

    # Parameters (glorot-uniform, matching pyg.nn.GATConv(heads=1, bias=False) init):
    limit_w = (6.0 / (Fin + Fout)) ** 0.5
    Wt = jax.random.uniform(kw, (Fin, Fout), jnp.float32, -limit_w, limit_w)   # = W.T
    limit_a = (6.0 / (1 + Fout)) ** 0.5
    att = jax.random.uniform(ka, (2, Fout), jnp.float32, -limit_a, limit_a)    # [src; dst]

    # TODO(synk): multi-head (heads>1) and the GraphGym `batch` wrapper are not modeled;
    #             the default single-head GATConv forward on node_feature is implemented.
    counts = build_edge_counts(edge_index, N)

    out = gat_forward(x, Wt, att, counts, tile_n=TILE_N, tile_src=TILE_SRC)
    jax.block_until_ready(out)

    out_ref = ref_gat_pyg(x, Wt, att, edge_index, N)
    err = float(jnp.max(jnp.abs(out - out_ref)))
    assert err < 3e-2, f"max abs error {err}"   # bf16 MXU operands vs f32 reference

    print("KERNEL_OK")
</pallas_src>

<mosaic_0001>
module attributes {stable_mosaic.version = 11 : i64} {
  func.func @transform_kernel(%arg0: i32, %arg1: memref<128x8xbf16, #tpu.memory_space<vmem>>, %arg2: memref<8x128xbf16, #tpu.memory_space<vmem>>, %arg3: memref<2x128xf32, #tpu.memory_space<vmem>>, %arg4: memref<128x128xbf16, #tpu.memory_space<vmem>>, %arg5: memref<128x1xf32, #tpu.memory_space<vmem>>, %arg6: memref<128x1xf32, #tpu.memory_space<vmem>>) attributes {dimension_semantics = [#tpu.dimension_semantics<parallel>], iteration_bounds = array<i64: 2>, scalar_prefetch = 0 : i64, scratch_operands = 0 : i64, tpu.core_type = #tpu.core_type<tc>, window_params = [{transform_indices = @transform_0, window_bounds = array<i64: 128, 8>}, {pipeline_mode = #tpu.pipeline_mode<synchronous>, transform_indices = @transform_1, window_bounds = array<i64: 8, 128>}, {pipeline_mode = #tpu.pipeline_mode<synchronous>, transform_indices = @transform_2, window_bounds = array<i64: 2, 128>}, {transform_indices = @transform_3, window_bounds = array<i64: 128, 128>}, {transform_indices = @transform_4, window_bounds = array<i64: 128, 1>}, {transform_indices = @transform_5, window_bounds = array<i64: 128, 1>}]} {
    %c0 = arith.constant 0 : index
    %c0_0 = arith.constant 0 : index
    %0 = vector.load %arg1[%c0, %c0_0] : memref<128x8xbf16, #tpu.memory_space<vmem>>, vector<128x8xbf16>
    %c0_1 = arith.constant 0 : index
    %c0_2 = arith.constant 0 : index
    %1 = vector.load %arg2[%c0_1, %c0_2] : memref<8x128xbf16, #tpu.memory_space<vmem>>, vector<8x128xbf16>
    %cst = arith.constant dense<0.000000e+00> : vector<128x128xf32>
    %2 = tpu.matmul %0, %1, %cst {dimension_numbers = #tpu.dot_dimension_numbers<[1], [0], [0], [1], [0, 0, 1, 1], [], []>} : vector<128x8xbf16>, vector<8x128xbf16>, vector<128x128xf32> -> vector<128x128xf32>
    %c0_3 = arith.constant 0 : index
    %c0_4 = arith.constant 0 : index
    %3 = vector.load %arg3[%c0_3, %c0_4] : memref<2x128xf32, #tpu.memory_space<vmem>>, vector<2x128xf32>
    %4 = vector.extract_strided_slice %3 {offsets = [0, 0], sizes = [1, 128], strides = [1, 1]} : vector<2x128xf32> to vector<1x128xf32>
    %5 = vector.broadcast %4 : vector<1x128xf32> to vector<128x128xf32>
    %6 = arith.mulf %2, %5 : vector<128x128xf32>
    %cst_5 = arith.constant dense<0.000000e+00> : vector<128xf32>
    %7 = vector.multi_reduction <add>, %6, %cst_5 [1] : vector<128x128xf32> to vector<128xf32>
    %8 = vector.shape_cast %7 : vector<128xf32> to vector<128x1xf32>
    %c0_6 = arith.constant 0 : index
    %c0_7 = arith.constant 0 : index
    %9 = vector.load %arg5[%c0_6, %c0_7] : memref<128x1xf32, #tpu.memory_space<vmem>>, vector<128x1xf32>
    tpu.vector_store %arg5[%c0_6, %c0_7], %8 {strides = array<i32>} : memref<128x1xf32, #tpu.memory_space<vmem>>, vector<128x1xf32>,
    %10 = vector.extract_strided_slice %3 {offsets = [1, 0], sizes = [1, 128], strides = [1, 1]} : vector<2x128xf32> to vector<1x128xf32>
    %11 = vector.broadcast %10 : vector<1x128xf32> to vector<128x128xf32>
    %12 = arith.mulf %2, %11 : vector<128x128xf32>
    %cst_8 = arith.constant dense<0.000000e+00> : vector<128xf32>
    %13 = vector.multi_reduction <add>, %12, %cst_8 [1] : vector<128x128xf32> to vector<128xf32>
    %14 = vector.shape_cast %13 : vector<128xf32> to vector<128x1xf32>
    %c0_9 = arith.constant 0 : index
    %c0_10 = arith.constant 0 : index
    %15 = vector.load %arg6[%c0_9, %c0_10] : memref<128x1xf32, #tpu.memory_space<vmem>>, vector<128x1xf32>
    tpu.vector_store %arg6[%c0_9, %c0_10], %14 {strides = array<i32>} : memref<128x1xf32, #tpu.memory_space<vmem>>, vector<128x1xf32>,
    %16 = arith.truncf %2 : vector<128x128xf32> to vector<128x128xbf16>
    %c0_11 = arith.constant 0 : index
    %c0_12 = arith.constant 0 : index
    %17 = vector.load %arg4[%c0_11, %c0_12] : memref<128x128xbf16, #tpu.memory_space<vmem>>, vector<128x128xbf16>
    tpu.vector_store %arg4[%c0_11, %c0_12], %16 {strides = array<i32>} : memref<128x128xbf16, #tpu.memory_space<vmem>>, vector<128x128xbf16>,
    return
  }
  func.func @transform_0(%arg0: i32) -> (i32, i32) {
    %c0_i32 = arith.constant 0 : i32
    %c0_i32_0 = arith.constant 0 : i32
    return %arg0, %c0_i32 : i32, i32
  }
  func.func @transform_1(%arg0: i32) -> (i32, i32) {
    %c0_i32 = arith.constant 0 : i32
    %c0_i32_0 = arith.constant 0 : i32
    %c0_i32_1 = arith.constant 0 : i32
    return %c0_i32, %c0_i32_0 : i32, i32
  }
  func.func @transform_2(%arg0: i32) -> (i32, i32) {
    %c0_i32 = arith.constant 0 : i32
    %c0_i32_0 = arith.constant 0 : i32
    %c0_i32_1 = arith.constant 0 : i32
    return %c0_i32, %c0_i32_0 : i32, i32
  }
  func.func @transform_3(%arg0: i32) -> (i32, i32) {
    %c0_i32 = arith.constant 0 : i32
    %c0_i32_0 = arith.constant 0 : i32
    return %arg0, %c0_i32 : i32, i32
  }
  func.func @transform_4(%arg0: i32) -> (i32, i32) {
    %c0_i32 = arith.constant 0 : i32
    %c0_i32_0 = arith.constant 0 : i32
    return %arg0, %c0_i32 : i32, i32
  }
  func.func @transform_5(%arg0: i32) -> (i32, i32) {
    %c0_i32 = arith.constant 0 : i32
    %c0_i32_0 = arith.constant 0 : i32
    return %arg0, %c0_i32 : i32, i32
  }
}

</mosaic_0001>

<bundles_post_ra>
// kernel: tpu_custom_call.1
= control target key start
LH: loop header
LB: loop body
LE: loop exit
PB: predicated region body
PF: predicated region fallthrough
CT: control target
= control target key end

     0   :  { %11 = vsyncpa [#allocation3], 0  ;;  %s1335_s0 = inlined_call_operand.vmem [shape: bf16[256,8], index: 0, kind: input, shape index: {}]   ;;  %s1336_s1 = inlined_call_operand.vmem [shape: bf16[8,128], index: 1, kind: input, shape index: {}]   ;;  %s1337_s2 = inlined_call_operand.vmem [shape: f32[2,128], index: 2, kind: input, shape index: {}]   ;;  %s1338_s3 = inlined_call_operand.hbm [shape: bf16[256,128], index: 3, kind: output, shape index: {0}]   ;;  %s1339_s4 = inlined_call_operand.vmem [shape: f32[256,1], index: 4, kind: output, shape index: {1}]   ;;  %s1340_s5 = inlined_call_operand.vmem [shape: f32[256,1], index: 5, kind: output, shape index: {2}]  }
   0x1   :  { %13 = vsyncpa [#allocation3 + $0x1], 0  ;;  %s1086_s18 = smov 0   ;;  %s1088_s19 = smov 0  }
   0x2   :  { %s1090_s20 = smov 0   ;;  %s1092_s21 = smov 0  }
   0x3 LB: > { %s1107_s22 = sadd.s32 4294967295, %s1051_s21   ;;  %s799_s23 = sadd.s32 4294967294, %s1051_s21   ;;  %s1051_s21 = sphi %s1092_s21, %s1346_s21   ;;  %s1047_s20 = sphi %s1090_s20, %s1345_s20   ;;  %s1043_s19 = sphi %s1088_s19, %s1344_s19   ;;  %s1039_s18 = sphi %s1086_s18, %s1343_s18  }
   0x4   : > { %s1111_s24 = sadd.s32 1, %s1051_s21   ;;  %s94_s25 = sadd.s32 1, %s1047_s20 }
   0x5   : > { %s91_s26 = ssub.s32 %s1051_s21, %s1111_s24  ;;  %p104_p0 = scmp.ne.s32.totalorder %s1047_s20, %s1043_s19 }
   0x6   : > { %p92_p1 = scmp.eq.s32.totalorder %s91_s26, 0  ;;  %p105_p2 = scmp.eq.s32.totalorder %s1107_s22, 1 }
   0x7   : > { %p110_p3 = scmp.ne.s32.totalorder %s1043_s19, %s1039_s18  ;;  %p111_p4 = scmp.eq.s32.totalorder %s799_s23, 1 }
   0x8   : > { %s1122_s27 = scalar_select %p92_p1, %s1047_s20, %s94_s25  }
   0x9   : > { %p1124_p5 = por %p105_p2, %p104_p0  ;;  %p1128_p6 = por %p111_p4, %p110_p3 }
   0xa   : > { %p802_p7 = scmp.ge.s32.totalorder %s1051_s21, 1  ;;  %p196_p8 = scmp.lt.s32.totalorder %s1051_s21, 3 }
   0xc   : > { %p197_p9 = pnand %p802_p7, %p196_p8 }
   0xd   : > { %s804_s7 = sshll.u32 (!%p197_p9), %s1107_s22, 4  ;;  %s217_s14 = sand.u32 (!%p197_p9), 1, %s1043_s19  }
   0xe   : > { %200 = sbr.rel (%p197_p9) target bundleno = 419 (0x1a3), region = 32  ;;  %p235_p10 = scmp.lt.s32.totalorder (!%p197_p9), %s804_s7, 31 }
   0xf   : > { %s803_s15 = sshll.u32 (!%p197_p9), %s217_s14, 6  ;;  %s863_s17 = sshll.u32 (!%p197_p9), %s1107_s22, 10 }
  0x10   : > { %s1166_s16 = scalar_lea.vmem (!%p197_p9), [#allocation2], %s803_s15  ;;  %s1214_s30 = scalar_lea.hbm (!%p197_p9), %s1338_s3, %s863_s17 }
  0x11   : > { %s679_s23 = sshll.u32 (!%p197_p9), %s1166_s16, 4  ;;  %s1220_s6 = scalar_lea.sflag (!%p197_p9), [#allocation3], %s217_s14  ;;  %s1216_s23 = int_to_ptr.vmem [resolvable:$true] %s679_s23 }
  0x12   : > { %s1053_s22 = smov (!%p197_p9), [#allocation2]  }
  0x13   : > { %v270_v0 = vld [vmem:[%s1336_s1] sm:$0xf]  ;;  %vm336_vm0 = vcmask 1043456   ;;  %s1348_s7 = smov (!%p235_p10, %s804_s7), 31  ;;  %vm311_vm1 = vcmask 64512   ;;  %v438_v10 = vlaneseq  ;;  %s995_s9 = sshll.u32 %s1053_s22, 4  ;;  %s996_s9 = int_to_ptr.vmem [resolvable:$false] %s995_s9 }
  0x14   : > { %940 = vmatprep.subr.msk.bf16.mxu0 %vm336_vm0, %v270_v0  ;;  %941 = vmatprep.subr.msk.bf16.mxu1 %vm336_vm0, %v270_v0  ;;  %v338_v1 = vsel %vm336_vm0, %v270_v0, 0  ;;  %s805_s8 = sshll.u32 %s1348_s7, 2  ;;  %v437_v13 = vld [vmem:[%s1337_s2] sm:$0x3]  ;;  %s997_s10 = scalar_lea.vmem %s996_s9, 2048 }
  0x15   : > { %921 = vmatpush3.bf16.msra.mxu0 %v338_v1  ;;  %939 = vmatpush3.bf16.msra.mxu1 %v338_v1  ;;  %s238_s11 = scalar_lea.vmem %s1335_s0, %s805_s8  ;;  %v439_v11 = vshrl.u32 %v438_v10, 7  ;;  %s991_s8 = scalar_lea.vmem %s1216_s23, 1024 }
  0x16   : > { %v983_v2 = vld [vmem:[%s238_s11] sm:$0xff]   ;;  %v985_v4 = vld [vmem:[%s238_s11 + $0x8] sm:$0xff]   ;;  %v987_v6 = vld [vmem:[%s238_s11 + $0x10] sm:$0xff]   ;;  %p992_p11 = scmp.ne.s32.totalorder %s1216_s23, %s991_s8  ;;  %p998_p0 = scmp.lt.s32.totalorder %s1216_s23, %s996_s9 }
  0x17   : > { %v984_v3 = vld [vmem:[%s238_s11 + $0x20] sm:$0xff]   ;;  %922 = vmatprep.mubr.msk.bf16.mxu0 %vm311_vm1, %v983_v2  ;;  %v986_v5 = vld [vmem:[%s238_s11 + $0x28] sm:$0xff]   ;;  %v989_v7 = vld [vmem:[%s238_s11 + $0x30] sm:$0xff]   ;;  %v440_v12 = vsub.s32 0, %v439_v11  ;;  %v509_v15 = vsub.s32 1, %v439_v11  ;;  %p999_p1 = scmp.lt.s32.totalorder %s997_s10, %s991_s8 }
  0x18   : > { %930 = vmatprep.mubr.msk.bf16.mxu1 %vm311_vm1, %v984_v3  ;;  %923 = vmatmul.mubr.msk.bf16.vlgmr.msra.gmra.mxu0 %vm311_vm1, %v985_v4  ;;  %v988_v8 = vld [vmem:[%s238_s11 + $0x18] sm:$0xff]   ;;  %p993_p12 = pnand %p992_p11, %p1124_p5 }
  0x19   : > { %931 = vmatmul.mubr.msk.bf16.vlgmr.msra.gmra.mxu1 %vm311_vm1, %v986_v5  ;;  %926 = vmatprep.mubr.msk.bf16.mxu0 %vm311_vm1, %v987_v6  ;;  %v990_v9 = vld [vmem:[%s238_s11 + $0x38] sm:$0xff]   ;;  %v1155_v14 = vrot.slane %v437_v13, %v440_v12  ;;  %v1162_v21 = vrot.slane %v437_v13, %v509_v15  ;;  %p1000_p2 = por %p999_p1, %p998_p0 }
  0x1a   : > { %934 = vmatprep.mubr.msk.bf16.mxu1 %vm311_vm1, %v989_v7  ;;  %p994_p13 = pneg %p993_p12 }
  0x1c   : > { %p1001_p3 = pnand %p1000_p2, %p994_p13 }
  0x20   : > { %927 = vmatmul.mubr.msk.bf16.gmra.mxu0 %vm311_vm1, %v988_v8 }
  0x21   : > { %935 = vmatmul.mubr.msk.bf16.gmra.mxu1 %vm311_vm1, %v990_v9 }
  0xd8   : > { %v924_v16 = vpop.f32.mrf.mxu0 }
  0xd9   : > { %v932_v17 = vpop.f32.mrf.mxu1  ;;  %v444_v18 = vmul.f32 %v924_v16, %v1155_v14  ;;  %v513_v29 = vmul.f32 %v924_v16, %v1162_v21 }
  0xda   : > { %v374_v19 = vpop.f32.mrf.mxu0  ;;  %v452_v20 = vmul.f32 %v932_v17, %v1155_v14  ;;  %v521_v36 = vmul.f32 %v932_v17, %v1162_v21 }
  0xdb   : > { %v406_v22 = vpop.f32.mrf.mxu1  ;;  %462 = vadd.xlane.f32.xlu1 %v444_v18  ;;  %v442_v43 = vmul.f32 %v1155_v14, %v374_v19  ;;  %v511_v52 = vmul.f32 %v1162_v21, %v374_v19 }
  0xdc   : > { %478 = vadd.xlane.f32.xlu0 %v452_v20  ;;  %v925_v23 = vpop.f32.mrf.mxu0  ;;  %v450_v50 = vmul.f32 %v1155_v14, %v406_v22  ;;  %v519_v54 = vmul.f32 %v1162_v21, %v406_v22 }
  0xdd   : > { %v872_v24 = vpack.c.bf16 %v925_v23, %v924_v16  ;;  %v933_v25 = vpop.f32.mrf.mxu1  ;;  %v445_v26 = vmul.f32 %v925_v23, %v1155_v14  ;;  %v514_v40 = vmul.f32 %v925_v23, %v1162_v21 }
  0xde   : > { %v892_v27 = vpack.c.bf16 %v933_v25, %v932_v17  ;;  %v377_v28 = vpop.f32.mrf.mxu0  ;;  %v453_v34 = vmul.f32 %v933_v25, %v1155_v14  ;;  %v522_v49 = vmul.f32 %v933_v25, %v1162_v21 }
  0xdf   : > { %904 = vst [vmem:[%s1166_s16 + $0x8] sm:$0xff] %v872_v24   ;;  %v867_v30 = vpack.c.bf16 %v377_v28, %v374_v19  ;;  %v409_v31 = vpop.f32.mrf.mxu1  ;;  %464 = vadd.xlane.f32.xlu1 %v445_v26  ;;  %v512_v53 = vmul.f32 %v1162_v21, %v377_v28  ;;  %v443_v56 = vmul.f32 %v1155_v14, %v377_v28 }
  0xe0   : > { %908 = vst [vmem:[%s1166_s16 + $0x28] sm:$0xff] %v892_v27   ;;  %v887_v32 = vpack.c.bf16 %v409_v31, %v406_v22  ;;  %531 = vadd.xlane.f32.xlu0 %v513_v29  ;;  %v928_v33 = vpop.f32.mrf.mxu0  ;;  %v451_v51 = vmul.f32 %v1155_v14, %v409_v31  ;;  %v520_v55 = vmul.f32 %v1162_v21, %v409_v31 }
  0xe1   : > { %868 = vst [vmem:[%s1166_s16] sm:$0xff] %v867_v30   ;;  %v1172_v35 = vpop.f32.mrf.mxu1  ;;  %v448_v58 = vmul.f32 %v928_v33, %v1155_v14  ;;  %v517_v62 = vmul.f32 %v928_v33, %v1162_v21 }
  0xe2   : > { %907 = vst [vmem:[%s1166_s16 + $0x20] sm:$0xff] %v887_v32   ;;  %v390_v37 = vpop.f32.mrf.mxu0  ;;  %v456_v60 = vmul.f32 %v1172_v35, %v1155_v14  ;;  %v525_v8 = vmul.f32 %v1172_v35, %v1162_v21 }
  0xe3   : > { %480 = vadd.xlane.f32.xlu1 %v453_v34  ;;  %v422_v38 = vpop.f32.mrf.mxu1  ;;  %v446_v0 = vmul.f32 %v1155_v14, %v390_v37  ;;  %v515_v4 = vmul.f32 %v1162_v21, %v390_v37 }
  0xe4   : > { %547 = vadd.xlane.f32.xlu0 %v521_v36  ;;  %v929_v39 = vpop.f32.mrf.mxu0  ;;  %v454_v2 = vmul.f32 %v1155_v14, %v422_v38  ;;  %v523_v6 = vmul.f32 %v1162_v21, %v422_v38 }
  0xe5   : > { %v882_v41 = vpack.c.bf16 %v929_v39, %v928_v33  ;;  %v937_v42 = vpop.f32.mrf.mxu1  ;;  %v449_v57 = vmul.f32 %v929_v39, %v1155_v14  ;;  %v518_v61 = vmul.f32 %v929_v39, %v1162_v21 }
  0xe6   : > { %v393_v44 = vpop.f32.mrf.mxu0  ;;  %v902_v45 = vpack.c.bf16 %v937_v42, %v1172_v35  ;;  %v457_v59 = vmul.f32 %v937_v42, %v1155_v14  ;;  %v526_v7 = vmul.f32 %v937_v42, %v1162_v21 }
  0xe7   : > { %533 = vadd.xlane.f32.xlu1 %v514_v40  ;;  %906 = vst [vmem:[%s1166_s16 + $0x18] sm:$0xff] %v882_v41   ;;  %v877_v46 = vpack.c.bf16 %v393_v44, %v390_v37  ;;  %v425_v47 = vpop.f32.mrf.mxu1  ;;  %v447_v63 = vmul.f32 %v1155_v14, %v393_v44  ;;  %v516_v3 = vmul.f32 %v1162_v21, %v393_v44 }
  0xe8   : > { %458 = vadd.xlane.f32.xlu0 %v442_v43  ;;  %910 = vst [vmem:[%s1166_s16 + $0x38] sm:$0xff] %v902_v45   ;;  %v897_v48 = vpack.c.bf16 %v425_v47, %v422_v38  ;;  %v455_v1 = vmul.f32 %v1155_v14, %v425_v47  ;;  %v524_v5 = vmul.f32 %v1162_v21, %v425_v47 }
  0xe9   : > { %905 = vst [vmem:[%s1166_s16 + $0x10] sm:$0xff] %v877_v46  }
  0xea   : > { %909 = vst [vmem:[%s1166_s16 + $0x30] sm:$0xff] %v897_v48  }
  0xeb   : > { %549 = vadd.xlane.f32.xlu1 %v522_v49 }
  0xec   : > { %474 = vadd.xlane.f32.xlu0 %v450_v50 }
  0xef   : > { %476 = vadd.xlane.f32.xlu1 %v451_v51 }
  0xf0   : > { %527 = vadd.xlane.f32.xlu0 %v511_v52 }
  0xf3   : > { %529 = vadd.xlane.f32.xlu1 %v512_v53 }
  0xf4   : > { %543 = vadd.xlane.f32.xlu0 %v519_v54 }
  0xf7   : > { %545 = vadd.xlane.f32.xlu1 %v520_v55 }
  0xf8   : > { %460 = vadd.xlane.f32.xlu0 %v443_v56 }
  0xfb   : > { %472 = vadd.xlane.f32.xlu1 %v449_v57 }
  0xfc   : > { %470 = vadd.xlane.f32.xlu0 %v448_v58 }
  0xff   : > { %488 = vadd.xlane.f32.xlu1 %v457_v59 }
 0x100   : > { %486 = vadd.xlane.f32.xlu0 %v456_v60 }
 0x103   : > { %541 = vadd.xlane.f32.xlu1 %v518_v61 }
 0x104   : > { %539 = vadd.xlane.f32.xlu0 %v517_v62 }
 0x107   : > { %468 = vadd.xlane.f32.xlu1 %v447_v63 }
 0x108   : > { %466 = vadd.xlane.f32.xlu0 %v446_v0 }
 0x10b   : > { %484 = vadd.xlane.f32.xlu1 %v455_v1 }
 0x10c   : > { %482 = vadd.xlane.f32.xlu0 %v454_v2 }
 0x10f   : > { %537 = vadd.xlane.f32.xlu1 %v516_v3 }
 0x110   : > { %535 = vadd.xlane.f32.xlu0 %v515_v4 }
 0x113   : > { %553 = vadd.xlane.f32.xlu1 %v524_v5 }
 0x114   : > { %551 = vadd.xlane.f32.xlu0 %v523_v6 }
 0x117   : > { %557 = vadd.xlane.f32.xlu1 %v526_v7 }
 0x118   : > { %555 = vadd.xlane.f32.xlu0 %v525_v8 }
 0x119   : > { %1004 = shalt.err (!%p1001_p3)
}
 0x11a   : > { %s1005_s11 = scalar_lea.hbm %s1214_s30, 1024  ;;  %s1009_s14 = scalar_lea.hbm %s1338_s3, 2048 }
 0x11b   : > { %p1006_p4 = scmp.ne.s32.totalorder %s1214_s30, %s1005_s11  ;;  %p1010_p9 = scmp.lt.s32.totalorder %s1214_s30, %s1338_s3 }
 0x11c   : > { %p1011_p10 = scmp.lt.s32.totalorder %s1009_s14, %s1005_s11 }
 0x11d   : > { %p1007_p7 = pnand %p1006_p4, %p1124_p5 }
 0x11e   : > { %p1012_p11 = por %p1011_p10, %p1010_p9 }
 0x11f   : > { %p1008_p8 = pneg %p1007_p7 }
 0x121   : > { %p1013_p12 = pnand %p1012_p11, %p1008_p8 }
 0x123   : > { %1016 = shalt.err (!%p1013_p12)
}
 0x124   : > { %s1054_s17 = smov 64   ;;  %s1055_s25 = smov 4   ;;  %vm490_vm2 = vcmask 7168  }
 0x125   : > { %942 = dma.vmem_to_hbm [thread:$0]  (%p1124_p5), %s1216_s23, 1024, %s1214_s30, %s1220_s6, %s1054_s17, %s1054_s17, %s1055_s25  }
 0x126   : > { %s807_s26 = sshll.u32 %s1348_s7, 3 }
 0x127   : > { %s1247_s9 = scalar_lea.vmem %s1339_s4, %s807_s26  ;;  %s1256_s7 = scalar_lea.vmem %s1340_s5, %s807_s26 }
 0x164   : > { %v463_v9 = vpop.xlane.xlu1 %462 }
 0x165   : > { %v479_v10 = vpop.xlane.xlu0 %478  ;;  %493 = vst.msk [vmem:[%s1247_s9 + $0x10] sm:$0xff] %vm490_vm2, %v463_v9 }
 0x166   : > { %501 = vst.msk [vmem:[%s1247_s9 + $0x50] sm:$0xff] %vm490_vm2, %v479_v10 }
 0x168   : > { %v465_v11 = vpop.xlane.xlu1 %464 }
 0x169   : > { %v532_v12 = vpop.xlane.xlu0 %531  ;;  %494 = vst.msk [vmem:[%s1247_s9 + $0x18] sm:$0xff] %vm490_vm2, %v465_v11 }
 0x16a   : > { %561 = vst.msk [vmem:[%s1256_s7 + $0x10] sm:$0xff] %vm490_vm2, %v532_v12 }
 0x16c   : > { %v481_v13 = vpop.xlane.xlu1 %480 }
 0x16d   : > { %v548_v14 = vpop.xlane.xlu0 %547  ;;  %502 = vst.msk [vmem:[%s1247_s9 + $0x58] sm:$0xff] %vm490_vm2, %v481_v13 }
 0x16e   : > { %569 = vst.msk [vmem:[%s1256_s7 + $0x50] sm:$0xff] %vm490_vm2, %v548_v14 }
 0x170   : > { %v534_v15 = vpop.xlane.xlu1 %533 }
 0x171   : > { %v459_v16 = vpop.xlane.xlu0 %458  ;;  %562 = vst.msk [vmem:[%s1256_s7 + $0x18] sm:$0xff] %vm490_vm2, %v534_v15 }
 0x172   : > { %491 = vst.msk [vmem:[%s1247_s9] sm:$0xff] %vm490_vm2, %v459_v16 }
 0x174   : > { %v550_v17 = vpop.xlane.xlu1 %549 }
 0x175   : > { %v475_v18 = vpop.xlane.xlu0 %474  ;;  %570 = vst.msk [vmem:[%s1256_s7 + $0x58] sm:$0xff] %vm490_vm2, %v550_v17 }
 0x176   : > { %499 = vst.msk [vmem:[%s1247_s9 + $0x40] sm:$0xff] %vm490_vm2, %v475_v18 }
 0x178   : > { %v477_v19 = vpop.xlane.xlu1 %476 }
 0x179   : > { %v528_v20 = vpop.xlane.xlu0 %527  ;;  %500 = vst.msk [vmem:[%s1247_s9 + $0x48] sm:$0xff] %vm490_vm2, %v477_v19 }
 0x17a   : > { %559 = vst.msk [vmem:[%s1256_s7] sm:$0xff] %vm490_vm2, %v528_v20 }
 0x17c   : > { %v530_v21 = vpop.xlane.xlu1 %529 }
 0x17d   : > { %v544_v22 = vpop.xlane.xlu0 %543  ;;  %560 = vst.msk [vmem:[%s1256_s7 + $0x8] sm:$0xff] %vm490_vm2, %v530_v21 }
 0x17e   : > { %567 = vst.msk [vmem:[%s1256_s7 + $0x40] sm:$0xff] %vm490_vm2, %v544_v22 }
 0x180   : > { %v546_v23 = vpop.xlane.xlu1 %545 }
 0x181   : > { %568 = vst.msk [vmem:[%s1256_s7 + $0x48] sm:$0xff] %vm490_vm2, %v546_v23  ;;  %v461_v24 = vpop.xlane.xlu0 %460 }
 0x182   : > { %492 = vst.msk [vmem:[%s1247_s9 + $0x8] sm:$0xff] %vm490_vm2, %v461_v24 }
 0x184   : > { %v473_v25 = vpop.xlane.xlu1 %472 }
 0x185   : > { %v471_v26 = vpop.xlane.xlu0 %470  ;;  %498 = vst.msk [vmem:[%s1247_s9 + $0x38] sm:$0xff] %vm490_vm2, %v473_v25 }
 0x186   : > { %497 = vst.msk [vmem:[%s1247_s9 + $0x30] sm:$0xff] %vm490_vm2, %v471_v26 }
 0x188   : > { %v489_v27 = vpop.xlane.xlu1 %488 }
 0x189   : > { %v487_v28 = vpop.xlane.xlu0 %486  ;;  %506 = vst.msk [vmem:[%s1247_s9 + $0x78] sm:$0xff] %vm490_vm2, %v489_v27 }
 0x18a   : > { %505 = vst.msk [vmem:[%s1247_s9 + $0x70] sm:$0xff] %vm490_vm2, %v487_v28 }
 0x18c   : > { %v542_v29 = vpop.xlane.xlu1 %541 }
 0x18d   : > { %v540_v30 = vpop.xlane.xlu0 %539  ;;  %566 = vst.msk [vmem:[%s1256_s7 + $0x38] sm:$0xff] %vm490_vm2, %v542_v29 }
 0x18e   : > { %565 = vst.msk [vmem:[%s1256_s7 + $0x30] sm:$0xff] %vm490_vm2, %v540_v30 }
 0x190   : > { %v469_v31 = vpop.xlane.xlu1 %468 }
 0x191   : > { %v467_v32 = vpop.xlane.xlu0 %466  ;;  %496 = vst.msk [vmem:[%s1247_s9 + $0x28] sm:$0xff] %vm490_vm2, %v469_v31 }
 0x192   : > { %495 = vst.msk [vmem:[%s1247_s9 + $0x20] sm:$0xff] %vm490_vm2, %v467_v32 }
 0x194   : > { %v485_v33 = vpop.xlane.xlu1 %484 }
 0x195   : > { %v483_v34 = vpop.xlane.xlu0 %482  ;;  %504 = vst.msk [vmem:[%s1247_s9 + $0x68] sm:$0xff] %vm490_vm2, %v485_v33 }
 0x196   : > { %503 = vst.msk [vmem:[%s1247_s9 + $0x60] sm:$0xff] %vm490_vm2, %v483_v34 }
 0x198   : > { %v538_v35 = vpop.xlane.xlu1 %537 }
 0x199   : > { %v536_v36 = vpop.xlane.xlu0 %535  ;;  %564 = vst.msk [vmem:[%s1256_s7 + $0x28] sm:$0xff] %vm490_vm2, %v538_v35 }
 0x19a   : > { %563 = vst.msk [vmem:[%s1256_s7 + $0x20] sm:$0xff] %vm490_vm2, %v536_v36 }
 0x19c   : > { %v554_v37 = vpop.xlane.xlu1 %553 }
 0x19d   : > { %v552_v38 = vpop.xlane.xlu0 %551  ;;  %572 = vst.msk [vmem:[%s1256_s7 + $0x68] sm:$0xff] %vm490_vm2, %v554_v37 }
 0x19e   : > { %571 = vst.msk [vmem:[%s1256_s7 + $0x60] sm:$0xff] %vm490_vm2, %v552_v38 }
 0x1a0   : > { %v558_v39 = vpop.xlane.xlu1 %557 }
 0x1a1   : > { %v556_v40 = vpop.xlane.xlu0 %555  ;;  %574 = vst.msk [vmem:[%s1256_s7 + $0x78] sm:$0xff] %vm490_vm2, %v558_v39 }
 0x1a2   : > { %573 = vst.msk [vmem:[%s1256_s7 + $0x70] sm:$0xff] %vm490_vm2, %v556_v40 }
 0x1a3 PF: > { %p948_p5 = scmp.ge.s32.totalorder %s1051_s21, 2  ;;  %s702_s30 = sand.u32 1, %s1039_s18  }
 0x1a4   : > { %s703_s6 = scalar_lea.sflag [#allocation3], %s702_s30 }
 0x1a5   : > { %p945_p13 = pnand %p948_p5, %p1128_p6 }
 0x1a7   : > { %p946_p0 = pneg %p945_p13 }
 0x1a9   : > { %1034 = dma.done.wait (%p946_p0), %s703_s6, 1024  }
 0x1aa   : > { %1036 = vsyncadd (%p946_p0), %s703_s6, 4294966272  ;;  %p16_p1 = scmp.ge.s32.totalorder %s1111_s24, 4   ;;  %s1343_s18 = smov %s1043_s19 }
 0x1ab   : > { %s1344_s19 = smov %s1047_s20  ;;  %s1345_s20 = smov %s1122_s27 }
 0x1ac   : > { %s1346_s21 = smov %s1111_s24  ;;  %18 = sbr.rel (!%p16_p1) target bundleno = 3 (0x3), region = 91 }
 0x1b1   :  { %724 = vsyncpa [#allocation3], 1 }
 0x1b2   :  { %726 = vsyncpa [#allocation3 + $0x1], 1 }

</bundles_post_ra>
